<compile_context>
chip_gen: v5e
topology: v5e:2x2
jax: 0.10.0
libtpu: 0.0.40
codegen_flags: <defaults>
</compile_context>

<pallas_src>
import functools

import jax
import jax.numpy as jnp
import numpy as np
from jax import lax
from jax.experimental import pallas as pl
from jax.experimental.pallas import tpu as pltpu


def ttp_kernel(GP, N, H, x_ref, wf_ref, cf_ref, bmat_ref, bg_ref, matrix_ref):
    """Process GP graphs (GP*N stacked node rows) in one grid step."""
    H2 = H * H
    x = x_ref[...]                                            # [GP*N, D]

    # Fused proj_g1 | proj_g2 (eval-mode BN folded into weights) + ReLU.
    # (dropout is identity in eval mode)
    h12 = jnp.dot(x, wf_ref[...], preferred_element_type=jnp.float32)
    h12 = jnp.maximum(h12 + cf_ref[...], 0.0)                 # [GP*N, H2+H]
    h1 = h12[:, :H2]                                          # [GP*N, H*H]
    h2 = h12[:, H2:]                                          # [GP*N, H]

    # proj_g applied after the (N,H,N)->(N,N,H) permute is algebraically
    #   out[i,j] = sum_m (sum_k wg[k]*h1[i,k*H+m]) * h2[j,m] + bg
    # The inner contraction over k is the structured matmul
    #   Bmat[k*H+m, m'] = wg[k] * delta(m, m')   (built once in the wrapper).
    A = jnp.dot(h1, bmat_ref[...], preferred_element_type=jnp.float32)  # [GP*N, H]

    # Per-graph mm: batched contraction over the hidden axis.
    a3 = A.reshape(GP, N, H)
    h23 = h2.reshape(GP, N, H)
    mm = jnp.einsum('gim,gjm->gij', a3, h23,
                    preferred_element_type=jnp.float32)       # [GP, N, N]
    mm = mm + bg_ref[0]                                       # SMEM scalar bias

    # mm -= diag_embed(diag(mm))  -> zero each graph's diagonal (built once).
    ii = lax.broadcasted_iota(jnp.int32, (N, N), 0)
    jj = lax.broadcasted_iota(jnp.int32, (N, N), 1)
    mm = jnp.where((ii == jj)[None, :, :], 0.0, mm)

    # F.softmax(mm, dim=0) * F.softmax(mm, dim=1), per graph.
    #   torch dim=0 (over rows i)  -> axis=1 of [GP, N, N]
    #   torch dim=1 (over cols j)  -> axis=2 of [GP, N, N]
    col_max = jnp.max(mm, axis=1, keepdims=True)              # [GP, 1, N]
    row_max = jnp.max(mm, axis=2, keepdims=True)              # [GP, N, 1]
    e_col = jnp.exp(mm - col_max)
    e_row = jnp.exp(mm - row_max)
    col_sum = jnp.sum(e_col, axis=1, keepdims=True)
    row_sum = jnp.sum(e_row, axis=2, keepdims=True)
    matrix_ref[...] = (e_col / col_sum) * (e_row / row_sum)


def make_ttp(G, N, in_dim, hidden_dim, *, graphs_per_step=None):
    D, H = in_dim, hidden_dim
    H2 = H * H
    if graphs_per_step is None:
        graphs_per_step = G          # fully collapsed grid (1 step) by default
    assert G % graphs_per_step == 0
    GP = graphs_per_step
    steps = G // GP

    in_specs = [
        pl.BlockSpec((GP * N, D), lambda i: (i, 0)),          # x_flat  [G*N, D]
        pl.BlockSpec((D, H2 + H), lambda i: (0, 0)),          # Wf (VMEM-resident)
        pl.BlockSpec((1, H2 + H), lambda i: (0, 0)),          # cf
        pl.BlockSpec((H2, H), lambda i: (0, 0)),              # Bmat
        pl.BlockSpec(memory_space=pltpu.MemorySpace.SMEM),    # bg  [1] scalar
    ]
    out_specs = pl.BlockSpec((GP, N, N), lambda i: (i, 0, 0))
    return pl.pallas_call(
        functools.partial(ttp_kernel, GP, N, H),
        out_shape=jax.ShapeDtypeStruct((G, N, N), jnp.float32),
        grid=(steps,),
        in_specs=in_specs,
        out_specs=out_specs,
        compiler_params=pltpu.CompilerParams(
            # With steps > 1 (e.g. graphs_per_step=G//2 on v7x) this shards the
            # graph batch across TensorCores; with steps == 1 it is a no-op.
            dimension_semantics=("parallel",)),
    )


def ttp_reference_single(x, w1, b1, g1, be1, rm1, rv1,
                         w2, b2, g2, be2, rm2, rv2, wg, bg, H, eps):
    """Pure-JAX mirror of the torch code (eval mode) for one graph."""
    a1 = g1 / jnp.sqrt(rv1 + eps)
    c1 = be1 - rm1 * a1
    a2 = g2 / jnp.sqrt(rv2 + eps)
    c2 = be2 - rm2 * a2
    N = x.shape[0]
    h1 = jnp.maximum((x @ w1 + b1) * a1 + c1, 0.0)          # [N, H*H]
    h2 = jnp.maximum((x @ w2 + b2) * a2 + c2, 0.0)          # [N, H]
    hp1 = h1.reshape(-1, H)                                  # [N*H, H]
    hp2 = h2.T                                               # [H, N]
    mm = hp1 @ hp2                                           # [N*H, N]
    mm = mm.reshape(N, H, N).transpose(0, 2, 1)              # [N, N, H]
    mm = mm @ wg + bg                                        # [N, N]
    mm = mm - jnp.diag(jnp.diag(mm))
    return jax.nn.softmax(mm, axis=0) * jax.nn.softmax(mm, axis=1)


if __name__ == "__main__":
    G, N, IN_DIM, H = 4, 8, 16, 8        # graphs, nodes/graph, in_dim, hidden_dim
    H2 = H * H
    EDGE_THRESH = 0.018
    EPS = 1e-5

    key = jax.random.PRNGKey(0)
    ks = jax.random.split(key, 16)

    # node features for G graphs (g.ndata['feature'] for each unbatched graph)
    x_b = jax.random.normal(ks[0], (G, N, IN_DIM), jnp.float32)

    # proj_g1: Linear(in_dim, hidden_dim**2)
    w1 = jax.random.normal(ks[1], (IN_DIM, H2), jnp.float32) * 0.2
    b1 = jax.random.normal(ks[2], (H2,), jnp.float32) * 0.1
    # bn_node_lr_g1 (eval mode)
    g1 = 1.0 + 0.1 * jax.random.normal(ks[3], (H2,), jnp.float32)
    be1 = 0.1 * jax.random.normal(ks[4], (H2,), jnp.float32)
    rm1 = 0.05 * jax.random.normal(ks[5], (H2,), jnp.float32)
    rv1 = 0.5 + 0.2 * jnp.abs(jax.random.normal(ks[6], (H2,), jnp.float32))

    # proj_g2: Linear(in_dim, hidden_dim)
    w2 = jax.random.normal(ks[7], (IN_DIM, H), jnp.float32) * 0.2
    b2 = jax.random.normal(ks[8], (H,), jnp.float32) * 0.1
    # bn_node_lr_g2
    g2 = 1.0 + 0.1 * jax.random.normal(ks[9], (H,), jnp.float32)
    be2 = 0.1 * jax.random.normal(ks[10], (H,), jnp.float32)
    rm2 = 0.05 * jax.random.normal(ks[11], (H,), jnp.float32)
    rv2 = 0.5 + 0.2 * jnp.abs(jax.random.normal(ks[12], (H,), jnp.float32))

    # proj_g: Linear(hidden_dim, 1)
    wg = jax.random.normal(ks[13], (H,), jnp.float32) * 0.3
    bg = 0.05

    # ---- one-time wrapper-side folding (zero per-call cost) -----------------
    # Fold eval-mode BN into the projections:
    #   relu((x@W + b)*a + c)  ==  relu(x @ (W*a) + ((b - rm)*a + beta))
    a1 = g1 / jnp.sqrt(rv1 + EPS)
    a2 = g2 / jnp.sqrt(rv2 + EPS)
    w1f = w1 * a1[None, :]
    c1f = (b1 - rm1) * a1 + be1                     # [H*H]
    w2f = w2 * a2[None, :]
    c2f = (b2 - rm2) * a2 + be2                     # [H]

    # Fuse the two projections into one matmul: [D, H*H + H] / [1, H*H + H].
    Wf = jnp.concatenate([w1f, w2f], axis=1)
    cf = jnp.concatenate([c1f, c2f])[None, :]

    # Structured matrix encoding proj_g applied after the (N,H,N) permute:
    #   Bmat[k*H + m, m'] = wg[k] * delta(m, m')
    Bmat = (wg[:, None, None] *
            jnp.eye(H, dtype=jnp.float32)[None, :, :]).reshape(H2, H)

    bg_s = jnp.full((1,), bg, jnp.float32)          # SMEM scalar

    # All graphs stacked into one node-row matrix (contiguous reshape, free).
    x_flat = x_b.reshape(G * N, IN_DIM)

    # ---- run kernel ---------------------------------------------------------
    ttp = make_ttp(G, N, IN_DIM, H)
    matrix = ttp(x_flat, Wf, cf, Bmat, bg_s)                    # [G, N, N]
    mask = matrix > EDGE_THRESH                                  # plain XLA, fuses
    jax.block_until_ready((matrix, mask))

    # ---- verify against a pure-JAX mirror of the torch formula --------------
    ref_matrix = jnp.stack([
        ttp_reference_single(x_b[g], w1, b1, g1, be1, rm1, rv1,
                             w2, b2, g2, be2, rm2, rv2, wg, bg, H, EPS)
        for g in range(G)
    ])
    ref_mask = ref_matrix > EDGE_THRESH

    m = np.asarray(matrix)
    rm = np.asarray(ref_matrix)
    assert np.allclose(m, rm, atol=1e-4, rtol=1e-3), \
        "matrix mismatch vs reference (max abs err %.3e)" % np.max(np.abs(m - rm))
    # mask must match reference except possibly for entries sitting right on
    # the threshold (f32 rounding differences).
    agree = (np.asarray(mask) == np.asarray(ref_mask)) | \
            (np.abs(rm - EDGE_THRESH) < 1e-4)
    assert np.all(agree), "edge mask inconsistent with reference"

    # TODO(synk): dgl.unbatch / g.add_edges(lr_connection) / dgl.batch (graph
    # mutation with data-dependent edge count) has no Pallas equivalent; the
    # dense per-graph edge mask returned here is the kernel-side result of
    # torch.where(matrix > edge_thresh).
    print("KERNEL_OK")
</pallas_src>

<mosaic_0001>
module attributes {stable_mosaic.version = 11 : i64} {
  func.func @ttp_kernel(%arg0: i32, %arg1: memref<32x16xf32, #tpu.memory_space<vmem>>, %arg2: memref<16x72xf32, #tpu.memory_space<vmem>>, %arg3: memref<1x72xf32, #tpu.memory_space<vmem>>, %arg4: memref<64x8xf32, #tpu.memory_space<vmem>>, %arg5: memref<1xf32, #tpu.memory_space<smem>>, %arg6: memref<4x8x8xf32, #tpu.memory_space<vmem>>) attributes {dimension_semantics = [#tpu.dimension_semantics<parallel>], iteration_bounds = array<i64: 1>, scalar_prefetch = 0 : i64, scratch_operands = 0 : i64, tpu.core_type = #tpu.core_type<tc>, window_params = [{transform_indices = @transform_0, window_bounds = array<i64: 32, 16>}, {pipeline_mode = #tpu.pipeline_mode<synchronous>, transform_indices = @transform_1, window_bounds = array<i64: 16, 72>}, {pipeline_mode = #tpu.pipeline_mode<synchronous>, transform_indices = @transform_2, window_bounds = array<i64: 1, 72>}, {pipeline_mode = #tpu.pipeline_mode<synchronous>, transform_indices = @transform_3, window_bounds = array<i64: 64, 8>}, {transform_indices = @transform_4, window_bounds = array<i64: 1>}, {transform_indices = @transform_5, window_bounds = array<i64: 4, 8, 8>}]} {
    %c0 = arith.constant 0 : index
    %c0_0 = arith.constant 0 : index
    %0 = vector.load %arg1[%c0, %c0_0] : memref<32x16xf32, #tpu.memory_space<vmem>>, vector<32x16xf32>
    %c0_1 = arith.constant 0 : index
    %c0_2 = arith.constant 0 : index
    %1 = vector.load %arg2[%c0_1, %c0_2] : memref<16x72xf32, #tpu.memory_space<vmem>>, vector<16x72xf32>
    %cst = arith.constant dense<0.000000e+00> : vector<32x72xf32>
    %2 = tpu.matmul %0, %1, %cst {dimension_numbers = #tpu.dot_dimension_numbers<[1], [0], [0], [1], [0, 0, 1, 1], [], []>} : vector<32x16xf32>, vector<16x72xf32>, vector<32x72xf32> -> vector<32x72xf32>
    %c0_3 = arith.constant 0 : index
    %c0_4 = arith.constant 0 : index
    %3 = vector.load %arg3[%c0_3, %c0_4] : memref<1x72xf32, #tpu.memory_space<vmem>>, vector<1x72xf32>
    %4 = vector.broadcast %3 : vector<1x72xf32> to vector<32x72xf32>
    %5 = arith.addf %2, %4 : vector<32x72xf32>
    %cst_5 = arith.constant 0.000000e+00 : f32
    %6 = vector.broadcast %cst_5 : f32 to vector<32x72xf32>
    %7 = arith.maximumf %5, %6 : vector<32x72xf32>
    %8 = vector.extract_strided_slice %7 {offsets = [0, 0], sizes = [32, 64], strides = [1, 1]} : vector<32x72xf32> to vector<32x64xf32>
    %9 = vector.extract_strided_slice %7 {offsets = [0, 64], sizes = [32, 8], strides = [1, 1]} : vector<32x72xf32> to vector<32x8xf32>
    %c0_6 = arith.constant 0 : index
    %c0_7 = arith.constant 0 : index
    %10 = vector.load %arg4[%c0_6, %c0_7] : memref<64x8xf32, #tpu.memory_space<vmem>>, vector<64x8xf32>
    %cst_8 = arith.constant dense<0.000000e+00> : vector<32x8xf32>
    %11 = tpu.matmul %8, %10, %cst_8 {dimension_numbers = #tpu.dot_dimension_numbers<[1], [0], [0], [1], [0, 0, 1, 1], [], []>} : vector<32x64xf32>, vector<64x8xf32>, vector<32x8xf32> -> vector<32x8xf32>
    %12 = vector.shape_cast %11 : vector<32x8xf32> to vector<4x8x8xf32>
    %13 = vector.shape_cast %9 : vector<32x8xf32> to vector<4x8x8xf32>
    "tpu.trace_start"() <{level = 10 : i32, message = "gim,gjm->gij"}> : () -> ()
    %cst_9 = arith.constant dense<0.000000e+00> : vector<4x8x8xf32>
    %14 = tpu.matmul %12, %13, %cst_9 {dimension_numbers = #tpu.dot_dimension_numbers<[2], [2], [1], [1], [0, 0, 0, 1, 1, 1], [0], [0]>} : vector<4x8x8xf32>, vector<4x8x8xf32>, vector<4x8x8xf32> -> vector<4x8x8xf32>
    "tpu.trace_stop"() : () -> ()
    %c0_10 = arith.constant 0 : index
    %15 = memref.load %arg5[%c0_10] : memref<1xf32, #tpu.memory_space<smem>>
    %16 = vector.broadcast %15 : f32 to vector<4x8x8xf32>
    %17 = arith.addf %14, %16 : vector<4x8x8xf32>
    %18 = tpu.iota {dimensions = array<i32: 0>} : vector<8x8xi32>
    %19 = tpu.iota {dimensions = array<i32: 1>} : vector<8x8xi32>
    %20 = arith.cmpi eq, %18, %19 : vector<8x8xi32>
    %21 = vector.shape_cast %20 : vector<8x8xi1> to vector<1x8x8xi1>
    %cst_11 = arith.constant 0.000000e+00 : f32
    %22 = vector.shape_cast %21 : vector<1x8x8xi1> to vector<1x8x8xi1>
    %23 = vector.broadcast %22 : vector<1x8x8xi1> to vector<4x8x8xi1>
    %24 = vector.broadcast %cst_11 : f32 to vector<4x8x8xf32>
    %25 = arith.select %23, %24, %17 : vector<4x8x8xi1>, vector<4x8x8xf32>
    %cst_12 = arith.constant dense<0xFF800000> : vector<4x8xf32>
    %26 = vector.multi_reduction <maximumf>, %25, %cst_12 [1] : vector<4x8x8xf32> to vector<4x8xf32>
    %27 = vector.shape_cast %26 : vector<4x8xf32> to vector<4x1x8xf32>
    %cst_13 = arith.constant dense<0xFF800000> : vector<4x8xf32>
    %28 = vector.multi_reduction <maximumf>, %25, %cst_13 [2] : vector<4x8x8xf32> to vector<4x8xf32>
    %29 = vector.shape_cast %28 : vector<4x8xf32> to vector<4x8x1xf32>
    %30 = vector.broadcast %27 : vector<4x1x8xf32> to vector<4x8x8xf32>
    %31 = arith.subf %25, %30 : vector<4x8x8xf32>
    %32 = math.exp %31 : vector<4x8x8xf32>
    %33 = vector.broadcast %29 : vector<4x8x1xf32> to vector<4x8x8xf32>
    %34 = arith.subf %25, %33 : vector<4x8x8xf32>
    %35 = math.exp %34 : vector<4x8x8xf32>
    %cst_14 = arith.constant dense<0.000000e+00> : vector<4x8xf32>
    %36 = vector.multi_reduction <add>, %32, %cst_14 [1] : vector<4x8x8xf32> to vector<4x8xf32>
    %37 = vector.shape_cast %36 : vector<4x8xf32> to vector<4x1x8xf32>
    %cst_15 = arith.constant dense<0.000000e+00> : vector<4x8xf32>
    %38 = vector.multi_reduction <add>, %35, %cst_15 [2] : vector<4x8x8xf32> to vector<4x8xf32>
    %39 = vector.shape_cast %38 : vector<4x8xf32> to vector<4x8x1xf32>
    %40 = vector.broadcast %37 : vector<4x1x8xf32> to vector<4x8x8xf32>
    %41 = arith.divf %32, %40 : vector<4x8x8xf32>
    %42 = vector.broadcast %39 : vector<4x8x1xf32> to vector<4x8x8xf32>
    %43 = arith.divf %35, %42 : vector<4x8x8xf32>
    %44 = arith.mulf %41, %43 : vector<4x8x8xf32>
    %c0_16 = arith.constant 0 : index
    %c0_17 = arith.constant 0 : index
    %c0_18 = arith.constant 0 : index
    %45 = vector.load %arg6[%c0_16, %c0_17, %c0_18] : memref<4x8x8xf32, #tpu.memory_space<vmem>>, vector<4x8x8xf32>
    tpu.vector_store %arg6[%c0_16, %c0_17, %c0_18], %44 {strides = array<i32>} : memref<4x8x8xf32, #tpu.memory_space<vmem>>, vector<4x8x8xf32>,
    return
  }
  func.func @transform_0(%arg0: i32) -> (i32, i32) {
    %c0_i32 = arith.constant 0 : i32
    %c0_i32_0 = arith.constant 0 : i32
    return %arg0, %c0_i32 : i32, i32
  }
  func.func @transform_1(%arg0: i32) -> (i32, i32) {
    %c0_i32 = arith.constant 0 : i32
    %c0_i32_0 = arith.constant 0 : i32
    %c0_i32_1 = arith.constant 0 : i32
    return %c0_i32, %c0_i32_0 : i32, i32
  }
  func.func @transform_2(%arg0: i32) -> (i32, i32) {
    %c0_i32 = arith.constant 0 : i32
    %c0_i32_0 = arith.constant 0 : i32
    %c0_i32_1 = arith.constant 0 : i32
    return %c0_i32, %c0_i32_0 : i32, i32
  }
  func.func @transform_3(%arg0: i32) -> (i32, i32) {
    %c0_i32 = arith.constant 0 : i32
    %c0_i32_0 = arith.constant 0 : i32
    %c0_i32_1 = arith.constant 0 : i32
    return %c0_i32, %c0_i32_0 : i32, i32
  }
  func.func @transform_4(%arg0: i32) -> i32 {
    %c0_i32 = arith.constant 0 : i32
    %c0_i32_0 = arith.constant 0 : i32
    return %c0_i32 : i32
  }
  func.func @transform_5(%arg0: i32) -> (i32, i32, i32) {
    %c0_i32 = arith.constant 0 : i32
    %c0_i32_0 = arith.constant 0 : i32
    %c0_i32_1 = arith.constant 0 : i32
    return %arg0, %c0_i32, %c0_i32_0 : i32, i32, i32
  }
}

</mosaic_0001>

<bundles_post_ra>
// kernel: tpu_custom_call.1
= control target key start
LH: loop header
LB: loop body
LE: loop exit
PB: predicated region body
PF: predicated region fallthrough
CT: control target
= control target key end

     0   :  { %vm32_vm0 = vcmask 130048   ;;  %s805_s0 = inlined_call_operand.vmem [shape: f32[32,16], index: 0, kind: input, shape index: {}]   ;;  %s806_s1 = inlined_call_operand.vmem [shape: f32[16,72], index: 1, kind: input, shape index: {}]   ;;  %s807_s2 = inlined_call_operand.vmem [shape: f32[1,72], index: 2, kind: input, shape index: {}]   ;;  %s808_s3 = inlined_call_operand.vmem [shape: f32[64,8], index: 3, kind: input, shape index: {}]   ;;  %s809_s4 = inlined_call_operand.<no memory space> [shape: f32[1], index: 4, kind: input, shape index: {}]   ;;  %s810_s5 = inlined_call_operand.hbm [shape: f32[4,8,8], index: 5, kind: output, shape index: {}]  }
   0x1   :  { %v27_v0 = vld [vmem:[%s806_s1 + $0x8] sm:$0xff]  ;;  %v26_v1 = vld [vmem:[%s806_s1] sm:$0xff]  ;;  %v85_v3 = vld [vmem:[%s808_s3 + $0x38] sm:$0xff] }
   0x2   :  { %59 = vmatpush.msra.mxu0 %v27_v0  ;;  %v22_v2 = vld [vmem:[%s805_s0] sm:$0xff]  ;;  %v84_v4 = vld [vmem:[%s808_s3 + $0x30] sm:$0xff]  ;;  %107 = vmatpush.msra.mxu1 %v85_v3  ;;  %v83_v5 = vld [vmem:[%s808_s3 + $0x28] sm:$0xff] }
   0x3   :  { %512 = vmatpush.msra.mxu2 %v85_v3 }
   0x4   :  { %60 = vmatpush.msra.mxu0 %v26_v1 }
   0x5   :  { %496 = vmatmul.msk.f32.vlgmr.msra.gmra.mxu0 %vm32_vm0, %v22_v2 }
   0x6   :  { %11 = vsyncpa [#allocation4], 0  ;;  %108 = vmatpush.msra.mxu1 %v84_v4  ;;  %v82_v6 = vld [vmem:[%s808_s3 + $0x20] sm:$0xff]  ;;  %513 = vmatpush.msra.mxu2 %v84_v4  ;;  %v81_v7 = vld [vmem:[%s808_s3 + $0x18] sm:$0xff]  ;;  %vm86_vm1 = vcmask 523264   ;;  %s583_s21 = smov 64   ;;  %v239_v35 = vlaneseq  ;;  %v129_v38 = vstv %s809_s4 }
   0x7   :  { %v23_v8 = vld [vmem:[%s805_s0 + $0x8] sm:$0xff]  ;;  %v24_v9 = vld [vmem:[%s805_s0 + $0x10] sm:$0xff]  ;;  %v25_v10 = vld [vmem:[%s805_s0 + $0x18] sm:$0xff]  ;;  %vm132_vm2 = vcmask 64512   ;;  %s584_s4 = smov [#allocation3]   ;;  %s484_s25 = sshll.u32 %s810_s5, 4  ;;  %s485_s25 = int_to_ptr.hbm [resolvable:$true] %s484_s25 }
   0x8   :  { %109 = vmatpush.msra.mxu1 %v83_v5  ;;  %514 = vmatpush.msra.mxu2 %v83_v5  ;;  %v80_v11 = vld [vmem:[%s808_s3 + $0x10] sm:$0xff]  ;;  %v79_v12 = vld [vmem:[%s808_s3 + $0x8] sm:$0xff]  ;;  %v78_v13 = vld [vmem:[%s808_s3] sm:$0xff]  ;;  %v240_v36 = vshrl.u32 %v239_v35, 7  ;;  %v242_v37 = vand.u32 127, %v239_v35  ;;  %s482_s22 = sshll.u32 %s584_s4, 4  ;;  %s483_s22 = int_to_ptr.vmem [resolvable:$true] %s482_s22 }
   0x9   :  { %v524_v14 = vld [vmem:[%s807_s2] ss:$0 sm:$0xff]  ;;  %s585_s26 = smov 128   ;;  %s586_s27 = smov 8  }
   0xa   :  { %110 = vmatpush.msra.mxu1 %v82_v6  ;;  %515 = vmatpush.msra.mxu2 %v82_v6  ;;  %vm243_vm3 = vcmp.eq.s32.totalorder %v240_v36, %v242_v37 }
   0xc   :  { %111 = vmatpush.msra.mxu1 %v81_v7  ;;  %516 = vmatpush.msra.mxu2 %v81_v7 }
   0xd   :  { %497 = vmatmul.msk.f32.gmra.mxu0 %vm32_vm0, %v23_v8 }
   0xe   :  { %112 = vmatpush.msra.mxu1 %v80_v11  ;;  %517 = vmatpush.msra.mxu2 %v80_v11 }
  0x10   :  { %113 = vmatpush.msra.mxu1 %v79_v12  ;;  %518 = vmatpush.msra.mxu2 %v79_v12 }
  0x12   :  { %114 = vmatpush.msra.mxu1 %v78_v13  ;;  %519 = vmatpush.msra.mxu2 %v78_v13 }
  0x15   :  { %498 = vmatmul.msk.f32.gmra.mxu0 %vm32_vm0, %v24_v9 }
  0x1d   :  { %499 = vmatmul.msk.f32.gmra.mxu0 %vm32_vm0, %v25_v10 }
  0x82   :  { %v62_v15 = vpop.f32.mrf.mxu0 }
  0x83   :  { %v63_v16 = vadd.f32 %v524_v14, %v62_v15 }
  0x85   :  { %v74_v17 = vmax.f32 %v63_v16, 0.0 }
  0x87   :  { %130 = vrot.lane.b32.xlu0 %v74_v17, %s583_s21  ;;  %500 = vmatmul.msk.f32.vlgmr.msra.gmra.mxu1 %vm86_vm1, %v74_v17 }
  0x8a   :  { %v65_v18 = vpop.f32.mrf.mxu0 }
  0x8b   :  { %v66_v19 = vadd.f32 %v524_v14, %v65_v18 }
  0x8d   :  { %v75_v20 = vmax.f32 %v66_v19, 0.0 }
  0x8f   :  { %158 = vrot.lane.b32.xlu0 %v75_v20, %s583_s21  ;;  %501 = vmatmul.msk.f32.gmra.mxu1 %vm86_vm1, %v75_v20 }
  0x92   :  { %v68_v21 = vpop.f32.mrf.mxu0 }
  0x93   :  { %v69_v22 = vadd.f32 %v524_v14, %v68_v21 }
  0x95   :  { %v76_v23 = vmax.f32 %v69_v22, 0.0 }
  0x97   :  { %185 = vrot.lane.b32.xlu1 %v76_v23, %s583_s21  ;;  %502 = vmatmul.msk.f32.gmra.mxu1 %vm86_vm1, %v76_v23 }
  0x9a   :  { %v71_v24 = vpop.f32.mrf.mxu0 }
  0x9b   :  { %v72_v25 = vadd.f32 %v524_v14, %v71_v24 }
  0x9d   :  { %v77_v26 = vmax.f32 %v72_v25, 0.0 }
  0x9f   :  { %503 = vmatmul.msk.f32.vlgmr.msra.gmra.mxu2 %vm86_vm1, %v77_v26  ;;  %212 = vrot.lane.b32.xlu1 %v77_v26, %s583_s21 }
  0xf9   :  { %v131_v27 = vpop.permute.xlu0 %130 }
  0xfa   :  { %504 = vmatpush.xpose.msk.msrb.mxu2 %vm132_vm2, %v131_v27 }
 0x101   :  { %v159_v28 = vpop.permute.xlu0 %158 }
 0x102   :  { %506 = vmatpush.xpose.msk.msra.mxu3 %vm132_vm2, %v159_v28 }
 0x104   :  { %v116_v29 = vpop.f32.mrf.mxu1 }
 0x105   :  { %505 = vmatmul.msk.f32.vlgmr.msrb.gmra.mxu2 %vm132_vm2, %v116_v29 }
 0x109   :  { %v186_v30 = vpop.permute.xlu1 %185 }
 0x10a   :  { %508 = vmatpush.xpose.msk.msra.mxu2 %vm132_vm2, %v186_v30 }
 0x10c   :  { %v119_v31 = vpop.f32.mrf.mxu1 }
 0x10d   :  { %507 = vmatmul.msk.f32.vlgmr.msra.gmra.mxu3 %vm132_vm2, %v119_v31 }
 0x111   :  { %v213_v32 = vpop.permute.xlu1 %212 }
 0x112   :  { %510 = vmatpush.xpose.msk.msrb.mxu3 %vm132_vm2, %v213_v32 }
 0x114   :  { %v122_v33 = vpop.f32.mrf.mxu1 }
 0x115   :  { %509 = vmatmul.msk.f32.vlgmr.msra.gmra.mxu2 %vm132_vm2, %v122_v33 }
 0x122   :  { %v125_v34 = vpop.f32.mrf.mxu2 }
 0x123   :  { %511 = vmatmul.msk.f32.vlgmr.msrb.gmra.mxu3 %vm132_vm2, %v125_v34 }
 0x188   :  { %v155_v39 = vpop.f32.mrf.mxu2 }
 0x189   :  { %v156_v40 = vadd.f32 %v155_v39, %v129_v38 }
 0x18b   :  { %v246_v41 = vsel %vm243_vm3, 0.0, %v156_v40 }
 0x18c   :  { %v250_v42 = vsel %vm132_vm2, %v246_v41, -inf }
 0x18d   :  { %278 = vmax.xlane.f32.xlu2 %v250_v42  ;;  %v251_v11 = vrot.slane %v250_v42, 4 }
 0x18f   :  { %v252_v12 = vmax.f32 %v250_v42, %v251_v11 }
 0x190   :  { %v182_v43 = vpop.f32.mrf.mxu3 }
 0x191   :  { %v183_v44 = vadd.f32 %v182_v43, %v129_v38  ;;  %v253_v13 = vrot.slane %v252_v12, 2 }
 0x193   :  { %v684_v45 = vsel %vm243_vm3, 0.0, %v183_v44  ;;  %v254_v15 = vmax.f32 %v252_v12, %v253_v13 }
 0x194   :  { %v257_v46 = vsel %vm132_vm2, %v684_v45, -inf }
 0x195   :  { %280 = vmax.xlane.f32.xlu2 %v257_v46  ;;  %v258_v14 = vrot.slane %v257_v46, 4  ;;  %v255_v17 = vrot.slane %v254_v15, 1 }
 0x197   :  { %v259_v16 = vmax.f32 %v257_v46, %v258_v14  ;;  %v256_v20 = vmax.f32 %v254_v15, %v255_v17 }
 0x198   :  { %v209_v47 = vpop.f32.mrf.mxu2 }
 0x199   :  { %v210_v48 = vadd.f32 %v209_v47, %v129_v38  ;;  %v260_v18 = vrot.slane %v259_v16, 2  ;;  %v286_v23 = vsub.f32 %v246_v41, %v256_v20 }
 0x19b   :  { %v689_v49 = vsel %vm243_vm3, 0.0, %v210_v48  ;;  %v261_v21 = vmax.f32 %v259_v16, %v260_v18  ;;  %v290_v26 = vmul.f32 1.442695, %v286_v23 }
 0x19c   :  { %v264_v50 = vsel %vm132_vm2, %v689_v49, -inf }
 0x19d   :  { %282 = vmax.xlane.f32.xlu0 %v264_v50  ;;  %v265_v19 = vrot.slane %v264_v50, 4  ;;  %v262_v24 = vrot.slane %v261_v21, 1 }
 0x19f   :  { %v266_v22 = vmax.f32 %v264_v50, %v265_v19  ;;  %v263_v27 = vmax.f32 %v261_v21, %v262_v24 }
 0x1a1   :  { %v267_v25 = vrot.slane %v266_v22, 2  ;;  %v287_v30 = vsub.f32 %v684_v45, %v263_v27 }
 0x1a3   :  { %v268_v28 = vmax.f32 %v266_v22, %v267_v25  ;;  %v292_v33 = vmul.f32 1.442695, %v287_v30 }
 0x1a5   :  { %v269_v31 = vrot.slane %v268_v28, 1 }
 0x1a6   :  { %v236_v51 = vpop.f32.mrf.mxu3 }
 0x1a7   :  { %v237_v52 = vadd.f32 %v236_v51, %v129_v38  ;;  %v270_v34 = vmax.f32 %v268_v28, %v269_v31 }
 0x1a9   :  { %v694_v53 = vsel %vm243_vm3, 0.0, %v237_v52  ;;  %v288_v37 = vsub.f32 %v689_v49, %v270_v34 }
 0x1aa   :  { %v271_v54 = vsel %vm132_vm2, %v694_v53, -inf }
 0x1ab   :  { %284 = vmax.xlane.f32.xlu1 %v271_v54  ;;  %v272_v29 = vrot.slane %v271_v54, 4 }
 0x1ad   :  { %v273_v32 = vmax.f32 %v271_v54, %v272_v29 }
 0x1af   :  { %v274_v36 = vrot.slane %v273_v32, 2 }
 0x1b1   :  { %v275_v39 = vmax.f32 %v273_v32, %v274_v36 }
 0x1b3   :  { %v276_v43 = vrot.slane %v275_v39, 1 }
 0x1b5   :  { %v277_v46 = vmax.f32 %v275_v39, %v276_v43 }
 0x200   :  { %v279_v55 = vpop.xlane.xlu2 %278 }
 0x201   :  { %v298_v56 = vsub.f32 %v246_v41, %v279_v55  ;;  %v294_v41 = vmul.f32 1.442695, %v288_v37 }
 0x203   :  { %v302_v57 = vmul.f32 1.442695, %v298_v56 }
 0x205   :  { %525 = vpow2.f32 %v302_v57 }
 0x208   :  { %v281_v58 = vpop.xlane.xlu2 %280 }
 0x209   :  { %v299_v59 = vsub.f32 %v684_v45, %v281_v58 }
 0x20b   :  { %v699_v60 = vpop.eup %525  ;;  %v304_v61 = vmul.f32 1.442695, %v299_v59 }
 0x20c   :  { %v338_v62 = vsel %vm132_vm2, %v699_v60, 0.0 }
 0x20d   :  { %527 = vpow2.f32 %v304_v61  ;;  %339 = vadd.xlane.f32.xlu2 %v338_v62 }
 0x210   :  { %v283_v63 = vpop.xlane.xlu0 %282 }
 0x211   :  { %v300_v0 = vsub.f32 %v689_v49, %v283_v63  ;;  %v289_v49 = vsub.f32 %v694_v53, %v277_v46 }
 0x213   :  { %v704_v1 = vpop.eup %527  ;;  %v306_v2 = vmul.f32 1.442695, %v300_v0  ;;  %v296_v55 = vmul.f32 1.442695, %v289_v49 }
 0x214   :  { %v341_v3 = vsel %vm132_vm2, %v704_v1, 0.0 }
 0x215   :  { %529 = vpow2.f32 %v306_v2  ;;  %342 = vadd.xlane.f32.xlu2 %v341_v3 }
 0x21b   :  { %v708_v4 = vpop.eup %529 }
 0x21c   :  { %v344_v5 = vsel %vm132_vm2, %v708_v4, 0.0 }
 0x21d   :  { %345 = vadd.xlane.f32.xlu2 %v344_v5 }
 0x21e   :  { %v285_v6 = vpop.xlane.xlu1 %284 }
 0x21f   :  { %v301_v7 = vsub.f32 %v694_v53, %v285_v6 }
 0x221   :  { %v308_v8 = vmul.f32 1.442695, %v301_v7 }
 0x223   :  { %531 = vpow2.f32 %v308_v8 }
 0x224   :  { %533 = vpow2.f32 %v290_v26 }
 0x225   :  { %535 = vpow2.f32 %v292_v33 }
 0x226   :  { %537 = vpow2.f32 %v294_v41 }
 0x227   :  { %539 = vpow2.f32 %v296_v55 }
 0x229   :  { %v713_v9 = vpop.eup %531 }
 0x22a   :  { %v347_v10 = vsel %vm132_vm2, %v713_v9, 0.0  ;;  %v718_v35 = vpop.eup %533 }
 0x22b   :  { %348 = vadd.xlane.f32.xlu2 %v347_v10  ;;  %v310_v38 = vsel %vm132_vm2, %v718_v35, 0.0  ;;  %v723_v42 = vpop.eup %535 }
 0x22c   :  { %v311_v40 = vrot.slane %v310_v38, 4  ;;  %v317_v45 = vsel %vm132_vm2, %v723_v42, 0.0  ;;  %v727_v50 = vpop.eup %537 }
 0x22d   :  { %v318_v48 = vrot.slane %v317_v45, 4  ;;  %v324_v54 = vsel %vm132_vm2, %v727_v50, 0.0  ;;  %v732_v63 = vpop.eup %539 }
 0x22e   :  { %v312_v44 = vadd.f32 %v311_v40, %v310_v38  ;;  %v325_v58 = vrot.slane %v324_v54, 4  ;;  %v331_v53 = vsel %vm132_vm2, %v732_v63, 0.0 }
 0x22f   :  { %v319_v52 = vadd.f32 %v318_v48, %v317_v45  ;;  %v332_v7 = vrot.slane %v331_v53, 4 }
 0x230   :  { %v313_v47 = vrot.slane %v312_v44, 2  ;;  %v326_v62 = vadd.f32 %v325_v58, %v324_v54 }
 0x231   :  { %v320_v57 = vrot.slane %v319_v52, 2  ;;  %v333_v11 = vadd.f32 %v332_v7, %v331_v53 }
 0x232   :  { %v314_v51 = vadd.f32 %v313_v47, %v312_v44  ;;  %v327_v2 = vrot.slane %v326_v62, 2 }
 0x233   :  { %v321_v61 = vadd.f32 %v320_v57, %v319_v52  ;;  %v334_v15 = vrot.slane %v333_v11, 2 }
 0x234   :  { %v315_v56 = vrot.slane %v314_v51, 1  ;;  %v328_v5 = vadd.f32 %v327_v2, %v326_v62 }
 0x235   :  { %v322_v0 = vrot.slane %v321_v61, 1  ;;  %v335_v19 = vadd.f32 %v334_v15, %v333_v11 }
 0x236   :  { %v316_v59 = vadd.f32 %v315_v56, %v314_v51  ;;  %v329_v8 = vrot.slane %v328_v5, 1 }
 0x237   :  { %v736_v3 = vadd.f32 %v322_v0, %v321_v61  ;;  %v336_v25 = vrot.slane %v335_v19, 1 }
 0x238   :  { %541 = vrcp.f32 %v316_v59  ;;  %v739_v12 = vadd.f32 %v329_v8, %v328_v5  ;;  %v361_v20 = vand.u32 2147483648, %v316_v59  ;;  %vm355_vm5 = vweird.f32 %v316_v59 }
 0x239   :  { %543 = vrcp.f32 %v736_v3  ;;  %v359_v28 = vand.u32 2147483647, %v316_v59  ;;  %v751_v36 = vadd.f32 %v336_v25, %v335_v19  ;;  %vm370_vm13 = vweird.f32 %v736_v3 }
 0x23a   :  { %v362_v29 = vor.u32 1.1754944e-38, %v361_v20  ;;  %v376_v49 = vand.u32 2147483648, %v736_v3  ;;  %v374_v55 = vand.u32 2147483647, %v736_v3  ;;  %v389_v11 = vand.u32 2147483647, %v739_v12 }
 0x23b   :  { %vm360_vm8 = vcmp.eq.f32.partialorder %v359_v28, 8.507059e+37 }
 0x23c   :  { %v377_v2 = vor.u32 1.1754944e-38, %v376_v49  ;;  %vm375_vm0 = vcmp.eq.f32.partialorder %v374_v55, 8.507059e+37 }
 0x23e   :  { %v542_v6 = vpop.eup %541 }
 0x23f   :  { %v351_v10 = vmul.f32 %v542_v6, %v316_v59  ;;  %v741_v14 = vpop.eup %543  ;;  %vm356_vm4 = vweird.f32 %v542_v6 }
 0x240   :  { %v366_v18 = vmul.f32 %v741_v14, %v736_v3  ;;  %vm357_vm6 = vmor %vm355_vm5, %vm356_vm4  ;;  %vm371_vm10 = vweird.f32 %v741_v14 }
 0x241   :  { %v352_v13 = vsub.f32 1.0, %v351_v10  ;;  %vm759_vm14 = vmor %vm370_vm13, %vm371_vm10 }
 0x242   :  { %v367_v23 = vsub.f32 1.0, %v366_v18 }
 0x243   :  { %v353_v17 = vmul.f32 %v542_v6, %v352_v13  ;;  %v391_v13 = vand.u32 2147483648, %v739_v12 }
 0x244   :  { %v368_v32 = vmul.f32 %v741_v14, %v367_v23 }
 0x245   :  { %v354_v22 = vadd.f32 %v542_v6, %v353_v17 }
 0x246   :  { %v369_v43 = vadd.f32 %v741_v14, %v368_v32 }
 0x247   :  { %v358_v31 = vsel %vm357_vm6, %v542_v6, %v354_v22  ;;  %vm385_vm6 = vweird.f32 %v739_v12 }
 0x248   :  { %v363_v39 = vsel %vm360_vm8, %v362_v29, %v358_v31  ;;  %v373_v58 = vsel %vm759_vm14, %v741_v14, %v369_v43  ;;  %vm400_vm14 = vweird.f32 %v751_v36 }
 0x249   :  { %v364_v52 = vmul.f32 %v718_v35, %v363_v39  ;;  %v378_v5 = vsel %vm375_vm0, %v377_v2, %v373_v58  ;;  %v406_v39 = vand.u32 2147483648, %v751_v36 }
 0x24a   :  { %v379_v15 = vmul.f32 %v723_v42, %v378_v5  ;;  %v392_v42 = vor.u32 1.1754944e-38, %v391_v13 }
 0x280   :  { %v340_v16 = vpop.xlane.xlu2 %339 }
 0x281   :  { %545 = vrcp.f32 %v340_v16  ;;  %v421_v34 = vand.u32 2147483648, %v340_v16  ;;  %v419_v38 = vand.u32 2147483647, %v340_v16  ;;  %vm415_vm9 = vweird.f32 %v340_v16 }
 0x282   :  { %547 = vrcp.f32 %v739_v12 }
 0x283   :  { %v422_v45 = vor.u32 1.1754944e-38, %v421_v34  ;;  %vm420_vm12 = vcmp.eq.f32.partialorder %v419_v38, 8.507059e+37 }
 0x287   :  { %v546_v21 = vpop.eup %545 }
 0x288   :  { %v746_v24 = vpop.eup %547  ;;  %v411_v26 = vmul.f32 %v546_v21, %v340_v16  ;;  %v343_v27 = vpop.xlane.xlu2 %342  ;;  %vm416_vm7 = vweird.f32 %v546_v21 }
 0x289   :  { %549 = vrcp.f32 %v343_v27  ;;  %v381_v33 = vmul.f32 %v746_v24, %v739_v12  ;;  %vm417_vm11 = vmor %vm415_vm9, %vm416_vm7  ;;  %v436_v61 = vand.u32 2147483648, %v343_v27  ;;  %v434_v35 = vand.u32 2147483647, %v343_v27 }
 0x28a   :  { %v412_v30 = vsub.f32 1.0, %v411_v26  ;;  %551 = vrcp.f32 %v751_v36  ;;  %vm430_vm1 = vweird.f32 %v343_v27  ;;  %vm386_vm3 = vweird.f32 %v746_v24 }
 0x28b   :  { %v382_v44 = vsub.f32 1.0, %v381_v33  ;;  %v437_v7 = vor.u32 1.1754944e-38, %v436_v61  ;;  %vm435_vm5 = vcmp.eq.f32.partialorder %v434_v35, 8.507059e+37  ;;  %vm778_vm7 = vmor %vm385_vm6, %vm386_vm3  ;;  %vm390_vm9 = vcmp.eq.f32.partialorder %v389_v11, 8.507059e+37 }
 0x28c   :  { %v413_v37 = vmul.f32 %v546_v21, %v412_v30 }
 0x28d   :  { %v383_v59 = vmul.f32 %v746_v24, %v382_v44 }
 0x28e   :  { %v414_v40 = vadd.f32 %v546_v21, %v413_v37 }
 0x28f   :  { %v550_v41 = vpop.eup %549  ;;  %v384_v6 = vadd.f32 %v746_v24, %v383_v59 }
 0x290   :  { %v418_v46 = vsel %vm417_vm11, %v546_v21, %v414_v40  ;;  %v426_v47 = vmul.f32 %v550_v41, %v343_v27  ;;  %v346_v48 = vpop.xlane.xlu2 %345  ;;  %vm431_vm15 = vweird.f32 %v550_v41  ;;  %v769_v53 = vpop.eup %551  ;;  %v404_v40 = vand.u32 2147483647, %v751_v36 }
 0x291   :  { %v423_v51 = vsel %vm420_vm12, %v422_v45, %v418_v46  ;;  %553 = vrcp.f32 %v346_v48  ;;  %vm432_vm4 = vmor %vm430_vm1, %vm431_vm15  ;;  %v396_v19 = vmul.f32 %v769_v53, %v751_v36  ;;  %v388_v20 = vsel %vm778_vm7, %v746_v24, %v384_v6 }
 0x292   :  { %v424_v56 = vmul.f32 %v699_v60, %v423_v51  ;;  %v427_v57 = vsub.f32 1.0, %v426_v47  ;;  %v451_v21 = vand.u32 2147483648, %v346_v48  ;;  %v449_v23 = vand.u32 2147483647, %v346_v48 }
 0x293   :  { %vm445_vm10 = vweird.f32 %v346_v48  ;;  %v393_v27 = vsel %vm390_vm9, %v392_v42, %v388_v20  ;;  %vm401_vm13 = vweird.f32 %v769_v53  ;;  %v407_v45 = vor.u32 1.1754944e-38, %v406_v39 }
 0x294   :  { %v470_v62 = vmul.f32 %v424_v56, %v364_v52  ;;  %v428_v0 = vmul.f32 %v550_v41, %v427_v57  ;;  %v452_v28 = vor.u32 1.1754944e-38, %v451_v21  ;;  %vm450_vm12 = vcmp.eq.f32.partialorder %v449_v23, 8.507059e+37  ;;  %vm402_vm15 = vmor %vm400_vm14, %vm401_vm13 }
 0x295   :  { %v394_v30 = vmul.f32 %v727_v50, %v393_v27  ;;  %vm405_vm1 = vcmp.eq.f32.partialorder %v404_v40, 8.507059e+37 }
 0x296   :  { %474 = vst.msk [vmem:[#allocation3] sm:$0xff] %vm132_vm2, %v470_v62  ;;  %v429_v3 = vadd.f32 %v550_v41, %v428_v0 }
 0x297   :  { %v554_v60 = vpop.eup %553 }
 0x298   :  { %v433_v8 = vsel %vm432_vm4, %v550_v41, %v429_v3  ;;  %v441_v10 = vmul.f32 %v554_v60, %v346_v48  ;;  %vm446_vm8 = vweird.f32 %v554_v60 }
 0x299   :  { %v438_v14 = vsel %vm435_vm5, %v437_v7, %v433_v8  ;;  %vm447_vm11 = vmor %vm445_vm10, %vm446_vm8 }
 0x29a   :  { %v439_v17 = vmul.f32 %v704_v1, %v438_v14  ;;  %v442_v18 = vsub.f32 1.0, %v441_v10  ;;  %v397_v1 = vsub.f32 1.0, %v396_v19 }
 0x29c   :  { %v471_v22 = vmul.f32 %v439_v17, %v379_v15  ;;  %v443_v12 = vmul.f32 %v554_v60, %v442_v18  ;;  %v398_v32 = vmul.f32 %v769_v53, %v397_v1 }
 0x29e   :  { %475 = vst.msk [vmem:[#allocation3 + $0x8] sm:$0xff] %vm132_vm2, %v471_v22  ;;  %v444_v25 = vadd.f32 %v554_v60, %v443_v12  ;;  %v349_v26 = vpop.xlane.xlu2 %348  ;;  %v399_v37 = vadd.f32 %v769_v53, %v398_v32 }
 0x29f   :  { %555 = vrcp.f32 %v349_v26  ;;  %v464_v44 = vand.u32 2147483647, %v349_v26  ;;  %vm460_vm3 = vweird.f32 %v349_v26 }
 0x2a0   :  { %v448_v29 = vsel %vm447_vm11, %v554_v60, %v444_v25  ;;  %v403_v41 = vsel %vm402_vm15, %v769_v53, %v399_v37 }
 0x2a1   :  { %v453_v24 = vsel %vm450_vm12, %v452_v28, %v448_v29  ;;  %v408_v47 = vsel %vm405_vm1, %v407_v45, %v403_v41  ;;  %vm465_vm5 = vcmp.eq.f32.partialorder %v464_v44, 8.507059e+37 }
 0x2a2   :  { %v454_v31 = vmul.f32 %v708_v4, %v453_v24  ;;  %v466_v4 = vand.u32 2147483648, %v349_v26  ;;  %v409_v51 = vmul.f32 %v732_v63, %v408_v47 }
 0x2a4   :  { %v472_v33 = vmul.f32 %v454_v31, %v394_v30  ;;  %v467_v48 = vor.u32 1.1754944e-38, %v466_v4 }
 0x2a5   :  { %v556_v34 = vpop.eup %555 }
 0x2a6   :  { %476 = vst.msk [vmem:[#allocation3 + $0x10] sm:$0xff] %vm132_vm2, %v472_v33  ;;  %v456_v38 = vmul.f32 %v556_v34, %v349_v26  ;;  %vm461_vm0 = vweird.f32 %v556_v34 }
 0x2a7   :  { %vm462_vm4 = vmor %vm460_vm3, %vm461_vm0 }
 0x2a8   :  { %v457_v50 = vsub.f32 1.0, %v456_v38 }
 0x2aa   :  { %v458_v43 = vmul.f32 %v556_v34, %v457_v50 }
 0x2ac   :  { %v459_v46 = vadd.f32 %v556_v34, %v458_v43 }
 0x2ae   :  { %v463_v49 = vsel %vm462_vm4, %v556_v34, %v459_v46 }
 0x2af   :  { %v468_v36 = vsel %vm465_vm5, %v467_v48, %v463_v49 }
 0x2b0   :  { %v469_v52 = vmul.f32 %v713_v9, %v468_v36 }
 0x2b2   :  { %v473_v54 = vmul.f32 %v469_v52, %v409_v51 }
 0x2b4   :  { %477 = vst.msk [vmem:[#allocation3 + $0x18] sm:$0xff] %vm132_vm2, %v473_v54 }
 0x2b5   :  { %490 = dma.vmem_to_hbm [thread:$0]  %s483_s22, 512, %s485_s25, [#allocation4], %s585_s26, %s585_s26, %s586_s27  }
 0x2b6   :  { %581 = dma.done.wait [#allocation4], 512  }
 0x2b7   :  { %582 = vsyncadd [#allocation4], 4294966784 }
 0x2b8   :  { %495 = vsyncpa [#allocation4], 1 }

</bundles_post_ra>
